<compile_context>
chip_gen: v7x
topology: tpu7x:2x2x1
jax: 0.10.0
libtpu: 0.0.40
codegen_flags: <defaults>
</compile_context>

<pallas_src>
import functools

import jax
import jax.numpy as jnp
from jax.experimental import pallas as pl
from jax.experimental.pallas import tpu as pltpu


def _round_up(x, m):
    return ((x + m - 1) // m) * m


def _round_down(x, m):
    return (x // m) * m


def _distill_kl_kernel(ys_ref, yt_ref, out_ref, *, inv_t, scale, n_rows, tile_b,
                       needs_mask):
    """Per-tile partial: scale * sum_{rows,classes} p_t * (log p_t - log p_s)."""
    ys = ys_ref[...].astype(jnp.float32) * inv_t
    yt = yt_ref[...].astype(jnp.float32) * inv_t

    # Student: log_softmax(y_s / T) pieces (max-shifted, per row).
    ys_max = jnp.max(ys, axis=1, keepdims=True)
    ys_shift = ys - ys_max
    lse_s = jnp.log(jnp.sum(jnp.exp(ys_shift), axis=1, keepdims=True))

    # Teacher: softmax / log_softmax(y_t / T) pieces.
    yt_max = jnp.max(yt, axis=1, keepdims=True)
    yt_shift = yt - yt_max
    exp_t = jnp.exp(yt_shift)
    sum_t = jnp.sum(exp_t, axis=1, keepdims=True)
    log_sum_t = jnp.log(sum_t)
    inv_sum_t = 1.0 / sum_t  # per-row reciprocal (tile_b divides, not tile_b*C)

    # p_t * (log p_t - log p_s)
    #   = (exp_t / sum_t) * ((yt_shift - log_sum_t) - (ys_shift - lse_s))
    # Fold 1/sum_t into the per-row contraction instead of dividing exp_t.
    diff = (yt_shift - ys_shift) + (lse_s - log_sum_t)
    row_kl = jnp.sum(exp_t * diff, axis=1, keepdims=True) * inv_sum_t  # (tile_b, 1)

    if needs_mask:
        # Last tile may read past the end of the array (undefined values).
        # All reductions above are per-row, so garbage rows only poison their
        # own row_kl; drop them with a select (never a 0/1 multiply: 0*NaN=NaN).
        i = pl.program_id(0)
        row = i * tile_b + jax.lax.broadcasted_iota(jnp.int32, (tile_b, 1), 0)
        row_kl = jnp.where(row < n_rows, row_kl, 0.0)

    out_ref[...] = (jnp.sum(row_kl) * scale).reshape(1, 1)


def distill_kl(y_s, y_t, temperature):
    """KL distillation loss: matches DistillKL.forward(y_s, y_t).

    Pass logits in their native dtype (e.g. bf16); do NOT upcast to f32 at
    the call site -- the kernel is HBM-bound and upcasts internally.
    """
    assert y_s.shape == y_t.shape and y_s.ndim == 2
    B, C = y_s.shape
    itemsize = max(jnp.dtype(y_s.dtype).itemsize, jnp.dtype(y_t.dtype).itemsize)

    # Physical VMEM (v5e/v6e: 128 MiB, v7x: 64 MiB). Fall back to the smallest
    # (v7x) size if the query is unavailable.
    try:
        vmem_cap = int(pltpu.get_tpu_info().vmem_capacity_bytes)
    except Exception:  # pragma: no cover - conservative fallback
        vmem_cap = 64 * 1024 * 1024

    # Sublane packing granule: 8 rows for 32-bit, 16 rows for 16-bit inputs.
    granule = 8 if itemsize >= 4 else 16

    # Per-step overhead amortization plateaus around 512-1024 rows; bigger
    # tiles only raise VMEM pressure (and shrink the grid -> worse pipelining).
    tile_cap = 512 if itemsize >= 4 else 1024

    # VMEM per tile row: 2 inputs x 2 pipeline buffers of the input dtype,
    # plus ~8 live f32 (tile_b, C) temporaries inside the kernel body.
    bytes_per_row = C * (2 * 2 * itemsize + 8 * 4)
    vmem_budget = vmem_cap // 2
    vmem_rows = max(granule, _round_down(vmem_budget // max(bytes_per_row, 1), granule))
    # TODO(synk): when even `granule` rows exceed the budget (LLM-vocab C,
    # especially on v7x's 64 MiB VMEM), add a class-axis grid dim with an
    # online max/logsumexp instead of holding full (tile_b, C) rows.

    # Keep the grid >= ~8 steps so double-buffering overlaps DMA with compute
    # and both v7x TensorCores get balanced work under "parallel" semantics.
    target_tiles = 8
    split_rows = max(granule, _round_up(pl.cdiv(B, target_tiles), granule))

    # tile_b is either B itself (block == full batch dim, legal) or a granule
    # multiple (legal sublane block).
    tile_b = min(B, tile_cap, vmem_rows, split_rows)
    n_tiles = pl.cdiv(B, tile_b)
    needs_mask = (B % tile_b) != 0

    # Right-size the VMEM limit from the actual footprint + 25% headroom,
    # clamped to 3/4 of physical (~48 MiB on v7x) so compiler scratch fits.
    footprint = (2 * 2 * tile_b * C * itemsize   # double-buffered inputs
                 + 8 * tile_b * C * 4            # live f32 temporaries
                 + 2 * 8 * 128 * 4)              # padded output double-buffer
    vmem_limit = int(footprint * 1.25) + (1 << 20)
    vmem_limit = max(8 << 20, min(vmem_limit, (vmem_cap * 3) // 4))

    temperature = float(temperature)
    kernel = functools.partial(
        _distill_kl_kernel,
        inv_t=1.0 / temperature,
        scale=(temperature * temperature) / float(B),
        n_rows=B,
        tile_b=tile_b,
        needs_mask=needs_mask,
    )

    cost = pl.CostEstimate(
        flops=14 * B * C,
        transcendentals=2 * B * C,
        bytes_accessed=2 * B * C * itemsize + n_tiles * 4,
    )

    partials = pl.pallas_call(
        kernel,
        out_shape=jax.ShapeDtypeStruct((n_tiles, 1), jnp.float32),
        grid_spec=pltpu.PrefetchScalarGridSpec(
            num_scalar_prefetch=0,
            grid=(n_tiles,),
            in_specs=[
                pl.BlockSpec((tile_b, C), lambda i: (i, 0)),
                pl.BlockSpec((tile_b, C), lambda i: (i, 0)),
            ],
            out_specs=pl.BlockSpec((1, 1), lambda i: (i, 0)),
        ),
        compiler_params=pltpu.CompilerParams(
            dimension_semantics=("parallel",),
            vmem_limit_bytes=vmem_limit,
        ),
        cost_estimate=cost,
    )(y_s, y_t)

    # Scale is folded into each partial; just reduce across tiles.
    return jnp.sum(partials)


def distill_kl_reference(y_s, y_t, temperature):
    """Pure-JAX reference (mirrors the PyTorch module), computed in f32."""
    T = temperature
    y_s = y_s.astype(jnp.float32)
    y_t = y_t.astype(jnp.float32)
    log_p_s = jax.nn.log_softmax(y_s / T, axis=1)
    p_t = jax.nn.softmax(y_t / T, axis=1)
    log_p_t = jax.nn.log_softmax(y_t / T, axis=1)
    kl = jnp.sum(p_t * (log_p_t - log_p_s))
    return kl * T * T / y_s.shape[0]


if __name__ == "__main__":
    key = jax.random.PRNGKey(0)
    k1, k2 = jax.random.split(key)

    T = 4.0  # distillation temperature (module hyper-parameter)

    # Small logits consistent with the module: batch=2, classes=4.
    B, C = 2, 4
    y_s = jax.random.normal(k1, (B, C), dtype=jnp.float32)
    y_t = jax.random.normal(k2, (B, C), dtype=jnp.float32)

    loss = jax.block_until_ready(distill_kl(y_s, y_t, T))
    ref = distill_kl_reference(y_s, y_t, T)
    assert jnp.allclose(loss, ref, rtol=1e-5, atol=1e-6), (loss, ref)

    # Larger, non-multiple-of-tile batch: exercises the multi-tile grid and
    # the per-row masked last tile.
    B2, C2 = 130, 257
    y_s2 = jax.random.normal(k1, (B2, C2), dtype=jnp.float32)
    y_t2 = jax.random.normal(k2, (B2, C2), dtype=jnp.float32)
    loss2 = jax.block_until_ready(distill_kl(y_s2, y_t2, T))
    ref2 = distill_kl_reference(y_s2, y_t2, T)
    assert jnp.allclose(loss2, ref2, rtol=1e-5, atol=1e-5), (loss2, ref2)

    # Native bf16 inputs (no wrapper upcast): kernel upcasts internally to f32.
    y_s3 = y_s2.astype(jnp.bfloat16)
    y_t3 = y_t2.astype(jnp.bfloat16)
    loss3 = jax.block_until_ready(distill_kl(y_s3, y_t3, T))
    ref3 = distill_kl_reference(y_s3, y_t3, T)
    assert jnp.allclose(loss3, ref3, rtol=1e-4, atol=1e-4), (loss3, ref3)

    print("KERNEL_OK")
</pallas_src>

<mosaic_0001>
module attributes {stable_mosaic.version = 11 : i64} {
  func.func @_distill_kl_kernel(%arg0: i32, %arg1: memref<2x4xf32, #tpu.memory_space<vmem>>, %arg2: memref<2x4xf32, #tpu.memory_space<vmem>>, %arg3: memref<1x1xf32, #tpu.memory_space<vmem>>) attributes {dimension_semantics = [#tpu.dimension_semantics<parallel>], iteration_bounds = array<i64: 1>, scalar_prefetch = 0 : i64, scratch_operands = 0 : i64, tpu.core_type = #tpu.core_type<tc>, window_params = [{transform_indices = @transform_0, window_bounds = array<i64: 2, 4>}, {transform_indices = @transform_1, window_bounds = array<i64: 2, 4>}, {transform_indices = @transform_2, window_bounds = array<i64: 1, 1>}]} {
    %c0 = arith.constant 0 : index
    %c0_0 = arith.constant 0 : index
    %0 = vector.load %arg1[%c0, %c0_0] : memref<2x4xf32, #tpu.memory_space<vmem>>, vector<2x4xf32>
    %cst = arith.constant 2.500000e-01 : f32
    %1 = vector.broadcast %cst : f32 to vector<2x4xf32>
    %2 = arith.mulf %0, %1 : vector<2x4xf32>
    %c0_1 = arith.constant 0 : index
    %c0_2 = arith.constant 0 : index
    %3 = vector.load %arg2[%c0_1, %c0_2] : memref<2x4xf32, #tpu.memory_space<vmem>>, vector<2x4xf32>
    %cst_3 = arith.constant 2.500000e-01 : f32
    %4 = vector.broadcast %cst_3 : f32 to vector<2x4xf32>
    %5 = arith.mulf %3, %4 : vector<2x4xf32>
    %cst_4 = arith.constant dense<0xFF800000> : vector<2xf32>
    %6 = vector.multi_reduction <maximumf>, %2, %cst_4 [1] : vector<2x4xf32> to vector<2xf32>
    %7 = vector.shape_cast %6 : vector<2xf32> to vector<2x1xf32>
    %8 = vector.broadcast %7 : vector<2x1xf32> to vector<2x4xf32>
    %9 = arith.subf %2, %8 : vector<2x4xf32>
    %10 = math.exp %9 : vector<2x4xf32>
    %cst_5 = arith.constant dense<0.000000e+00> : vector<2xf32>
    %11 = vector.multi_reduction <add>, %10, %cst_5 [1] : vector<2x4xf32> to vector<2xf32>
    %12 = vector.shape_cast %11 : vector<2xf32> to vector<2x1xf32>
    %13 = math.log %12 : vector<2x1xf32>
    %cst_6 = arith.constant dense<0xFF800000> : vector<2xf32>
    %14 = vector.multi_reduction <maximumf>, %5, %cst_6 [1] : vector<2x4xf32> to vector<2xf32>
    %15 = vector.shape_cast %14 : vector<2xf32> to vector<2x1xf32>
    %16 = vector.broadcast %15 : vector<2x1xf32> to vector<2x4xf32>
    %17 = arith.subf %5, %16 : vector<2x4xf32>
    %18 = math.exp %17 : vector<2x4xf32>
    %cst_7 = arith.constant dense<0.000000e+00> : vector<2xf32>
    %19 = vector.multi_reduction <add>, %18, %cst_7 [1] : vector<2x4xf32> to vector<2xf32>
    %20 = vector.shape_cast %19 : vector<2xf32> to vector<2x1xf32>
    %21 = math.log %20 : vector<2x1xf32>
    %cst_8 = arith.constant 1.000000e+00 : f32
    %22 = vector.broadcast %cst_8 : f32 to vector<2x1xf32>
    %23 = arith.divf %22, %20 : vector<2x1xf32>
    %24 = arith.subf %17, %9 : vector<2x4xf32>
    %25 = arith.subf %13, %21 : vector<2x1xf32>
    %26 = vector.broadcast %25 : vector<2x1xf32> to vector<2x4xf32>
    %27 = arith.addf %24, %26 : vector<2x4xf32>
    %28 = arith.mulf %18, %27 : vector<2x4xf32>
    %cst_9 = arith.constant dense<0.000000e+00> : vector<2xf32>
    %29 = vector.multi_reduction <add>, %28, %cst_9 [1] : vector<2x4xf32> to vector<2xf32>
    %30 = vector.shape_cast %29 : vector<2xf32> to vector<2x1xf32>
    %31 = arith.mulf %30, %23 : vector<2x1xf32>
    %32 = vector.shape_cast %31 : vector<2x1xf32> to vector<1x2x1xf32>
    %cst_10 = arith.constant dense<0.000000e+00> : vector<1xf32>
    %33 = vector.multi_reduction <add>, %32, %cst_10 [1, 2] : vector<1x2x1xf32> to vector<1xf32>
    %34 = vector.shape_cast %33 : vector<1xf32> to vector<1x1x1xf32>
    %35 = vector.extract %34[0, 0, 0] : f32 from vector<1x1x1xf32>
    %cst_11 = arith.constant 8.000000e+00 : f32
    %36 = arith.mulf %35, %cst_11 : f32
    %37 = vector.broadcast %36 : f32 to vector<1x1xf32>
    %c0_12 = arith.constant 0 : index
    %c0_13 = arith.constant 0 : index
    %38 = vector.load %arg3[%c0_12, %c0_13] : memref<1x1xf32, #tpu.memory_space<vmem>>, vector<1x1xf32>
    tpu.vector_store %arg3[%c0_12, %c0_13], %37 {strides = array<i32>} : memref<1x1xf32, #tpu.memory_space<vmem>>, vector<1x1xf32>,
    return
  }
  func.func @transform_0(%arg0: i32) -> (i32, i32) {
    %c0_i32 = arith.constant 0 : i32
    %c0_i32_0 = arith.constant 0 : i32
    return %arg0, %c0_i32 : i32, i32
  }
  func.func @transform_1(%arg0: i32) -> (i32, i32) {
    %c0_i32 = arith.constant 0 : i32
    %c0_i32_0 = arith.constant 0 : i32
    return %arg0, %c0_i32 : i32, i32
  }
  func.func @transform_2(%arg0: i32) -> (i32, i32) {
    %c0_i32 = arith.constant 0 : i32
    %c0_i32_0 = arith.constant 0 : i32
    return %arg0, %c0_i32 : i32, i32
  }
}

</mosaic_0001>

<bundles_post_ra>
// kernel: tpu_custom_call.1
= control target key start
LH: loop header
LB: loop body
LE: loop exit
PB: predicated region body
PF: predicated region fallthrough
CT: control target
= control target key end

     0   :  { %7 = vsyncpa [#allocation3], 0  ;;  %s202_s0 = inlined_call_operand.hbm [shape: f32[2,4], index: 0, kind: input, shape index: {}]   ;;  %s203_s1 = inlined_call_operand.vmem [shape: f32[2,4], index: 1, kind: input, shape index: {}]   ;;  %s204_s2 = inlined_call_operand.hbm [shape: f32[1,1], index: 2, kind: output, shape index: {}]  }
   0x1   :  { %8 = vsyncpa [#allocation4], 0  ;;  %s153_s9 = smov [#allocation2]   ;;  %s105_s13 = scalar_lea.hbm %s202_s0, 32 }
   0x2   :  { %s15_s10 = sshll.u32 %s153_s9, 4  ;;  %p106_p0 = scmp.ne.s32.totalorder %s202_s0, %s105_s13  ;;  %s16_s10 = int_to_ptr.vmem [resolvable:$true] %s15_s10 }
   0x3   :  { %p109_p1 = scmp.lt.u32.totalorder %s105_s13, %s202_s0 }
   0x5   :  { %p111_p2 = pnand %p109_p1, %p106_p0 }
   0x7   :  { %114 = shalt.err (!%p111_p2)
}
   0x8   :  { %s115_s18 = scalar_lea.vmem %s16_s10, 32  ;;  %p120_p4 = scmp.lt.s32.totalorder %s16_s10, %s16_s10 }
   0x9   :  { %p116_p3 = scmp.ne.s32.totalorder %s16_s10, %s115_s18  ;;  %p121_p5 = scmp.lt.s32.totalorder %s115_s18, %s115_s18 }
   0xb   :  { %p122_p6 = por %p121_p5, %p120_p4 }
   0xd   :  { %p123_p7 = pnand %p122_p6, %p116_p3 }
   0xf   :  { %126 = shalt.err (!%p123_p7)
}
  0x10   :  { %18 = dma.hbm_to_vmem [thread:$0]  %s202_s0, 32, %s16_s10, [#allocation3]  }
  0x11   :  { %149 = dma.done.wait [#allocation3], 32  }
  0x12   :  { %150 = vsyncadd [#allocation3], 4294967264  ;;  %v24_v0 = vld [vmem:[#allocation2] sm:$0x3]  ;;  %vm28_vm0 = vcmask 25600   ;;  %vm61_vm1 = vcmask 1024  }
  0x13   :  { %v26_v1 = vld [vmem:[%s203_s1] sm:$0x3]  ;;  %v25_v2 = vmul.f32 0.25, %v24_v0  ;;  %s154_s0 = smov [#allocation5]   ;;  %vm74_vm2 = vcmask 0  }
  0x14   :  { %v27_v3 = vmul.f32 0.25, %v26_v1  ;;  %s82_s1 = sshll.u32 %s154_s0, 4  ;;  %s83_s1 = int_to_ptr.vmem [resolvable:$true] %s82_s1 }
  0x15   :  { %v29_v4 = vsel %vm28_vm0, %v25_v2, -inf  ;;  %s127_s25 = scalar_lea.vmem %s83_s1, 16  ;;  %s131_s26 = scalar_lea.vmem %s83_s1, 32 }
  0x16   :  { %30 = vmax.xlane.f32.xlu0 %v29_v4  ;;  %v40_v5 = vsel %vm28_vm0, %v27_v3, -inf  ;;  %p128_p8 = scmp.ne.s32.totalorder %s83_s1, %s127_s25  ;;  %p132_p9 = scmp.lt.s32.totalorder %s83_s1, %s83_s1 }
  0x17   :  { %p133_p10 = scmp.lt.s32.totalorder %s131_s26, %s127_s25 }
  0x19   :  { %p134_p11 = por %p133_p10, %p132_p9 }
  0x1a   :  { %41 = vmax.xlane.f32.xlu0 %v40_v5 }
  0x1b   :  { %p135_p12 = pnand %p134_p11, %p128_p8 }
  0xa3   :  { %v31_v6 = vpop.xlane.xlu0 %30 }
  0xa4   :  { %v32_v7 = vsub.f32 %v25_v2, %v31_v6 }
  0xa6   :  { %v33_v8 = vmul.f32 1.442695, %v32_v7 }
  0xa7   :  { %v42_v9 = vpop.xlane.xlu0 %41 }
  0xa8   :  { %95 = vpow2.f32 %v33_v8  ;;  %v43_v10 = vsub.f32 %v27_v3, %v42_v9 }
  0xaa   :  { %v44_v11 = vmul.f32 1.442695, %v43_v10  ;;  %v53_v12 = vsub.f32 %v43_v10, %v32_v7 }
  0xac   :  { %97 = vpow2.f32 %v44_v11 }
  0xb2   :  { %v96_v13 = vpop.eup %95 }
  0xb3   :  { %v35_v14 = vsel %vm28_vm0, %v96_v13, 0.0 }
  0xb4   :  { %36 = vadd.xlane.f32.xlu1 %v35_v14 }
  0xb6   :  { %v98_v15 = vpop.eup %97 }
  0xb7   :  { %v46_v16 = vsel %vm28_vm0, %v98_v15, 0.0 }
  0xb8   :  { %47 = vadd.xlane.f32.xlu1 %v46_v16 }
 0x141   :  { %v37_v17 = vpop.xlane.xlu1 %36 }
 0x142   :  { %99 = vlog2.f32 %v37_v17 }
 0x145   :  { %v48_v18 = vpop.xlane.xlu1 %47 }
 0x146   :  { %101 = vlog2.f32 %v48_v18 }
 0x147   :  { %103 = vrcp.f32 %v48_v18 }
 0x14c   :  { %v100_v19 = vpop.eup %99 }
 0x14d   :  { %v39_v21 = vmul.f32 0.6931472, %v100_v19 }
 0x150   :  { %v102_v20 = vpop.eup %101 }
 0x151   :  { %v50_v22 = vmul.f32 0.6931472, %v102_v20  ;;  %v104_v27 = vpop.eup %103 }
 0x153   :  { %v54_v23 = vsub.f32 %v39_v21, %v50_v22 }
 0x155   :  { %v55_v24 = vadd.f32 %v54_v23, %v53_v12 }
 0x157   :  { %v56_v25 = vmul.f32 %v98_v15, %v55_v24 }
 0x159   :  { %v57_v26 = vsel %vm28_vm0, %v56_v25, 0.0 }
 0x15a   :  { %58 = vadd.xlane.f32.xlu0 %v57_v26 }
 0x1e7   :  { %v59_v28 = vpop.xlane.xlu0 %58 }
 0x1e8   :  { %v60_v29 = vmul.f32 %v104_v27, %v59_v28 }
 0x1ea   :  { %v62_v30 = vsel %vm61_vm1, %v60_v29, 0.0 }
 0x1eb   :  { %63 = vadd.xlane.f32.xlu1 %v62_v30 }
 0x278   :  { %v64_v31 = vpop.xlane.xlu1 %63 }
 0x279   :  { %v65_v32 = vrot.slane %v64_v31, 4 }
 0x27b   :  { %v66_v33 = vadd.f32 %v65_v32, %v64_v31 }
 0x27d   :  { %v67_v34 = vrot.slane %v66_v33, 2 }
 0x27f   :  { %v68_v35 = vadd.f32 %v67_v34, %v66_v33 }
 0x281   :  { %v69_v36 = vrot.slane %v68_v35, 1 }
 0x283   :  { %v70_v37 = vadd.f32 %v69_v36, %v68_v35 }
 0x285   :  { %91 = vpush %v70_v37 }
 0x2b6   :  { %s92_s23 = spop %91 }
 0x2b7   :  { %s72_s24 = smul.f32 8.0, %s92_s23 }
 0x2b9   :  { %v73_v38 = vstv %s72_s24 }
 0x2ba   :  { %75 = vst.msk [vmem:[#allocation5] sm:$0x1] %vm74_vm2, %v73_v38 }
 0x2bb   :  { %138 = shalt.err (!%p135_p12)
}
 0x2bc   :  { %s139_s29 = scalar_lea.hbm %s204_s2, 16 }
 0x2bd   :  { %p140_p13 = scmp.ne.s32.totalorder %s204_s2, %s139_s29  ;;  %p143_p0 = scmp.lt.u32.totalorder %s139_s29, %s204_s2 }
 0x2bf   :  { %p145_p1 = pnand %p143_p0, %p140_p13 }
 0x2c1   :  { %148 = shalt.err (!%p145_p1)
}
 0x2c2   :  { %85 = dma.vmem_to_hbm [thread:$0]  %s83_s1, 16, %s204_s2, [#allocation4]  }
 0x2c3   :  { %151 = dma.done.wait [#allocation4], 16  }
 0x2c4   :  { %152 = vsyncadd [#allocation4], 4294967280 }
 0x2c5   :  { %89 = vsyncpa [#allocation3], 1 }
 0x2c6   :  { %90 = vsyncpa [#allocation4], 1 }

</bundles_post_ra>
